<compile_context>
chip_gen: v7x
topology: tpu7x:2x2x1
jax: 0.10.0
libtpu: 0.0.40
codegen_flags: <defaults>
</compile_context>

<pallas_src>
import jax
import jax.numpy as jnp
from jax.experimental import pallas as pl
from jax.experimental.pallas import tpu as pltpu


def _round_up(v, m):
    return (v + m - 1) // m * m


def vgae_kernel(x_ref, adj_ref, w1_ref, b1_ref, wh_ref, bh_ref, eps_ref, out_ref):
    """Whole graph resident in VMEM (gridless).

    x_ref   [N, x_dim]          f32
    adj_ref [N, N]              bf16  (truncated at rest; MXU operand dtype)
    w1_ref  [x_dim, hidden]     bf16
    b1_ref  [1, hidden]         f32   (added to f32 accumulator; tiny DMA)
    wh_ref  [hidden, slab-N]    bf16  fused + zero-padded [W_mu | W_logstd | 0]
    bh_ref  [1, slab-N]         f32
    eps_ref [N, z_dim]          f32
    out_ref [N, slab]           f32   lane-dense slab [A_pred | mu | log_var | pad]
    """
    f32 = jnp.float32
    bf16 = jnp.bfloat16
    z_dim = eps_ref.shape[1]

    adj_bf = adj_ref[...]                       # already bf16 at rest, no VPU cast

    # encoder layer 1: h = relu(adj @ (x @ W1 + b1));  bf16 MXU operands, f32 acc
    xw = jnp.dot(x_ref[...].astype(bf16), w1_ref[...],
                 preferred_element_type=f32) + b1_ref[...]
    h = jnp.maximum(
        jnp.dot(adj_bf, xw.astype(bf16), preferred_element_type=f32), 0.0)

    # fused, lane-padded heads: one matmul pair produces [mu | log_var | 0] slab
    heads = jnp.dot(h.astype(bf16), wh_ref[...],
                    preferred_element_type=f32) + bh_ref[...]
    mulv = jnp.dot(adj_bf, heads.astype(bf16), preferred_element_type=f32)

    # NOTE: lane-offset-z_dim split lowers to masked selects; negligible at
    # z_dim=16 — keep each head's lane span a multiple of 128 (or split once with
    # pltpu.roll) if z_dim ever scales up.
    mu = mulv[:, :z_dim]
    lv = mulv[:, z_dim:2 * z_dim]

    # reparameterization stays f32 (v5e VPU/EUP have no bf16): Z = eps*exp(.5lv)+mu
    z = eps_ref[...] * jnp.exp(0.5 * lv) + mu

    # decoder: A_pred = sigmoid(Z @ Z^T); contract dim 1 of both operands so the
    # transposed operand feeds the MXU without an explicit XLU transpose.
    zb = z.astype(bf16)
    logits = jax.lax.dot_general(zb, zb,
                                 dimension_numbers=(((1,), (1,)), ((), ())),
                                 preferred_element_type=f32)
    a_pred = jax.nn.sigmoid(logits)
    # TODO(synk): on v6e/v7x emit A_pred as bf16 (bf16 EUP sigmoid + half the N^2
    # writeback); kept f32 so the same kernel is exact-enough on v5e.

    # single unmasked, full-lane-width store of the combined output slab.
    out_ref[...] = jnp.concatenate([a_pred, mulv], axis=1)


def prepare_model(adj, params, *, lane=128):
    """One-time host-side packing (call at init, NOT per forward):
      * adjacency truncated to bf16 at rest (halves its DMA; it is truncated to
        bf16 for the MXU anyway, so numerics are unchanged),
      * mu / log-stddev heads fused into one weight, zero-padded so the combined
        output slab [A_pred | mu | log_var | pad] is a multiple of 128 lanes,
      * matmul weights stored bf16 (deletes in-kernel casts, halves weight DMA);
        biases stay f32 (added to f32 accumulators, negligible bytes)."""
    N = adj.shape[0]
    z_dim = params["wmu"].shape[1]
    slab = _round_up(N + 2 * z_dim, lane)
    heads_pad = slab - N - 2 * z_dim

    wh = jnp.concatenate([params["wmu"], params["wls"]], axis=1)
    bh = jnp.concatenate([params["bmu"], params["bls"]], axis=1)
    wh = jnp.pad(wh, ((0, 0), (0, heads_pad)))
    bh = jnp.pad(bh, ((0, 0), (0, heads_pad)))

    prepped = dict(
        w1=params["w1"].astype(jnp.bfloat16),
        b1=params["b1"],
        wh=wh.astype(jnp.bfloat16),
        bh=bh,
    )
    return adj.astype(jnp.bfloat16), prepped


@jax.jit
def vgae_forward(x, adj_bf16, prepped, eps):
    N = adj_bf16.shape[0]
    x_dim = x.shape[1]
    hidden = prepped["w1"].shape[1]
    z_dim = eps.shape[1]
    heads_w = prepped["wh"].shape[1]
    slab = N + heads_w

    flops = 2 * (N * x_dim * hidden        # x @ W1
                 + N * N * hidden          # adj @ (xW1 + b1)
                 + N * hidden * heads_w    # h @ W_heads (padded)
                 + N * N * heads_w         # adj @ heads
                 + N * z_dim * N)          # Z @ Z^T
    transcendentals = N * z_dim + N * N    # exp + sigmoid
    bytes_accessed = (4 * x.size + 2 * adj_bf16.size
                      + 2 * prepped["w1"].size + 4 * prepped["b1"].size
                      + 2 * prepped["wh"].size + 4 * prepped["bh"].size
                      + 4 * eps.size + 4 * N * slab)

    vmem = lambda: pl.BlockSpec(memory_space=pltpu.MemorySpace.VMEM)
    out = pl.pallas_call(
        vgae_kernel,
        out_shape=jax.ShapeDtypeStruct((N, slab), jnp.float32),
        in_specs=[vmem() for _ in range(7)],
        out_specs=vmem(),
        cost_estimate=pl.CostEstimate(flops=flops,
                                      transcendentals=transcendentals,
                                      bytes_accessed=bytes_accessed),
    )(x, adj_bf16, prepped["w1"], prepped["b1"], prepped["wh"], prepped["bh"], eps)

    a_pred = out[:, :N]
    mu = out[:, N:N + z_dim]
    log_var = out[:, N + z_dim:N + 2 * z_dim]
    return a_pred, mu, log_var


if __name__ == "__main__":
    key = jax.random.PRNGKey(0)
    N, x_dim, hidden_dim, z_dim = 64, 32, 32, 16
    ks = jax.random.split(key, 8)

    x = jax.random.normal(ks[0], (N, x_dim), jnp.float32)

    # deterministic symmetric normalized adjacency
    a_raw = (jax.random.uniform(ks[1], (N, N)) < 0.1).astype(jnp.float32)
    adj = jnp.clip(a_raw + a_raw.T + jnp.eye(N, dtype=jnp.float32), 0.0, 1.0)
    dinv = 1.0 / jnp.sqrt(jnp.sum(adj, axis=1))
    adj = adj * dinv[:, None] * dinv[None, :]

    def lin_init(k, fan_in, fan_out):
        # mirrors nn.Linear default init; weight stored transposed [in, out]
        kw, kb = jax.random.split(k)
        bound = 1.0 / jnp.sqrt(jnp.float32(fan_in))
        w = jax.random.uniform(kw, (fan_in, fan_out), jnp.float32, -bound, bound)
        b = jax.random.uniform(kb, (1, fan_out), jnp.float32, -bound, bound)
        return w, b

    w1, b1 = lin_init(ks[2], x_dim, hidden_dim)
    wmu, bmu = lin_init(ks[3], hidden_dim, z_dim)
    wls, bls = lin_init(ks[4], hidden_dim, z_dim)
    # torch.randn_like(std) equivalent, generated deterministically outside the kernel
    eps = jax.random.normal(ks[5], (N, z_dim), jnp.float32)

    params = dict(w1=w1, b1=b1, wmu=wmu, bmu=bmu, wls=wls, bls=bls)
    adj_bf, prepped = prepare_model(adj, params)   # one-time init cost

    a_pred, mu, log_var = vgae_forward(x, adj_bf, prepped, eps)
    jax.block_until_ready((a_pred, mu, log_var))

    # correctness check against a pure-f32 JAX reference; tolerance covers the
    # bf16 MXU operands (f32 accumulation) used inside the kernel.
    h = jnp.maximum(adj @ (x @ w1 + b1), 0.0)
    mu_r = adj @ (h @ wmu + bmu)
    lv_r = adj @ (h @ wls + bls)
    z_r = eps * jnp.exp(0.5 * lv_r) + mu_r
    a_r = jax.nn.sigmoid(z_r @ z_r.T)
    assert jnp.allclose(mu, mu_r, atol=2e-2, rtol=2e-2)
    assert jnp.allclose(log_var, lv_r, atol=2e-2, rtol=2e-2)
    assert jnp.allclose(a_pred, a_r, atol=5e-2, rtol=5e-2)

    print("KERNEL_OK")
</pallas_src>

<mosaic_0001>
module attributes {stable_mosaic.version = 11 : i64} {
  func.func @vgae_kernel(%arg0: memref<64x32xf32, #tpu.memory_space<vmem>>, %arg1: memref<64x64xbf16, #tpu.memory_space<vmem>>, %arg2: memref<32x32xbf16, #tpu.memory_space<vmem>>, %arg3: memref<1x32xf32, #tpu.memory_space<vmem>>, %arg4: memref<32x64xbf16, #tpu.memory_space<vmem>>, %arg5: memref<1x64xf32, #tpu.memory_space<vmem>>, %arg6: memref<64x16xf32, #tpu.memory_space<vmem>>, %arg7: memref<64x128xf32, #tpu.memory_space<vmem>>) attributes {dimension_semantics = [], scalar_prefetch = 0 : i64, scratch_operands = 0 : i64, tpu.core_type = #tpu.core_type<tc>} {
    %c0 = arith.constant 0 : index
    %c0_0 = arith.constant 0 : index
    %0 = vector.load %arg1[%c0, %c0_0] : memref<64x64xbf16, #tpu.memory_space<vmem>>, vector<64x64xbf16>
    %c0_1 = arith.constant 0 : index
    %c0_2 = arith.constant 0 : index
    %1 = vector.load %arg0[%c0_1, %c0_2] : memref<64x32xf32, #tpu.memory_space<vmem>>, vector<64x32xf32>
    %2 = arith.truncf %1 : vector<64x32xf32> to vector<64x32xbf16>
    %c0_3 = arith.constant 0 : index
    %c0_4 = arith.constant 0 : index
    %3 = vector.load %arg2[%c0_3, %c0_4] : memref<32x32xbf16, #tpu.memory_space<vmem>>, vector<32x32xbf16>
    %cst = arith.constant dense<0.000000e+00> : vector<64x32xf32>
    %4 = tpu.matmul %2, %3, %cst {dimension_numbers = #tpu.dot_dimension_numbers<[1], [0], [0], [1], [0, 0, 1, 1], [], []>} : vector<64x32xbf16>, vector<32x32xbf16>, vector<64x32xf32> -> vector<64x32xf32>
    %c0_5 = arith.constant 0 : index
    %c0_6 = arith.constant 0 : index
    %5 = vector.load %arg3[%c0_5, %c0_6] : memref<1x32xf32, #tpu.memory_space<vmem>>, vector<1x32xf32>
    %6 = vector.broadcast %5 : vector<1x32xf32> to vector<64x32xf32>
    %7 = arith.addf %4, %6 : vector<64x32xf32>
    %8 = arith.truncf %7 : vector<64x32xf32> to vector<64x32xbf16>
    %cst_7 = arith.constant dense<0.000000e+00> : vector<64x32xf32>
    %9 = tpu.matmul %0, %8, %cst_7 {dimension_numbers = #tpu.dot_dimension_numbers<[1], [0], [0], [1], [0, 0, 1, 1], [], []>} : vector<64x64xbf16>, vector<64x32xbf16>, vector<64x32xf32> -> vector<64x32xf32>
    %cst_8 = arith.constant 0.000000e+00 : f32
    %10 = vector.broadcast %cst_8 : f32 to vector<64x32xf32>
    %11 = arith.maximumf %9, %10 : vector<64x32xf32>
    %12 = arith.truncf %11 : vector<64x32xf32> to vector<64x32xbf16>
    %c0_9 = arith.constant 0 : index
    %c0_10 = arith.constant 0 : index
    %13 = vector.load %arg4[%c0_9, %c0_10] : memref<32x64xbf16, #tpu.memory_space<vmem>>, vector<32x64xbf16>
    %cst_11 = arith.constant dense<0.000000e+00> : vector<64x64xf32>
    %14 = tpu.matmul %12, %13, %cst_11 {dimension_numbers = #tpu.dot_dimension_numbers<[1], [0], [0], [1], [0, 0, 1, 1], [], []>} : vector<64x32xbf16>, vector<32x64xbf16>, vector<64x64xf32> -> vector<64x64xf32>
    %c0_12 = arith.constant 0 : index
    %c0_13 = arith.constant 0 : index
    %15 = vector.load %arg5[%c0_12, %c0_13] : memref<1x64xf32, #tpu.memory_space<vmem>>, vector<1x64xf32>
    %16 = vector.broadcast %15 : vector<1x64xf32> to vector<64x64xf32>
    %17 = arith.addf %14, %16 : vector<64x64xf32>
    %18 = arith.truncf %17 : vector<64x64xf32> to vector<64x64xbf16>
    %cst_14 = arith.constant dense<0.000000e+00> : vector<64x64xf32>
    %19 = tpu.matmul %0, %18, %cst_14 {dimension_numbers = #tpu.dot_dimension_numbers<[1], [0], [0], [1], [0, 0, 1, 1], [], []>} : vector<64x64xbf16>, vector<64x64xbf16>, vector<64x64xf32> -> vector<64x64xf32>
    %20 = vector.extract_strided_slice %19 {offsets = [0, 0], sizes = [64, 16], strides = [1, 1]} : vector<64x64xf32> to vector<64x16xf32>
    %21 = vector.extract_strided_slice %19 {offsets = [0, 16], sizes = [64, 16], strides = [1, 1]} : vector<64x64xf32> to vector<64x16xf32>
    %c0_15 = arith.constant 0 : index
    %c0_16 = arith.constant 0 : index
    %22 = vector.load %arg6[%c0_15, %c0_16] : memref<64x16xf32, #tpu.memory_space<vmem>>, vector<64x16xf32>
    %cst_17 = arith.constant 5.000000e-01 : f32
    %23 = vector.broadcast %cst_17 : f32 to vector<64x16xf32>
    %24 = arith.mulf %23, %21 : vector<64x16xf32>
    %25 = math.exp %24 : vector<64x16xf32>
    %26 = arith.mulf %22, %25 : vector<64x16xf32>
    %27 = arith.addf %26, %20 : vector<64x16xf32>
    %28 = arith.truncf %27 : vector<64x16xf32> to vector<64x16xbf16>
    %cst_18 = arith.constant dense<0.000000e+00> : vector<64x64xf32>
    %29 = tpu.matmul %28, %28, %cst_18 {dimension_numbers = #tpu.dot_dimension_numbers<[1], [1], [0], [0], [0, 0, 1, 0], [], []>} : vector<64x16xbf16>, vector<64x16xbf16>, vector<64x64xf32> -> vector<64x64xf32>
    %30 = arith.negf %29 : vector<64x64xf32>
    %31 = math.exp %30 : vector<64x64xf32>
    %cst_19 = arith.constant 1.000000e+00 : f32
    %32 = vector.broadcast %cst_19 : f32 to vector<64x64xf32>
    %33 = arith.addf %32, %31 : vector<64x64xf32>
    %34 = arith.divf %32, %33 : vector<64x64xf32>
    %35 = tpu.concatenate %34, %19 in 1 : vector<64x64xf32>, vector<64x64xf32> -> vector<64x128xf32>
    %c0_20 = arith.constant 0 : index
    %c0_21 = arith.constant 0 : index
    %36 = vector.load %arg7[%c0_20, %c0_21] : memref<64x128xf32, #tpu.memory_space<vmem>>, vector<64x128xf32>
    tpu.vector_store %arg7[%c0_20, %c0_21], %35 {strides = array<i32>} : memref<64x128xf32, #tpu.memory_space<vmem>>, vector<64x128xf32>,
    return
  }
}

</mosaic_0001>

<bundles_post_ra>
// kernel: vgae_forward.1
= control target key start
LH: loop header
LB: loop body
LE: loop exit
PB: predicated region body
PF: predicated region fallthrough
CT: control target
= control target key end

     0   :  { %vm70_vm0 = vcmask 261120   ;;  %vm172_vm1 = vcmask 523264   ;;  %s902_s9 = smov 64   ;;  %vm515_vm2 = vcmask 130048   ;;  %s1133_s2 = inlined_call_operand.vmem [shape: bf16[32,32], index: 2, kind: input, shape index: {}]   ;;  %s1134_s0 = inlined_call_operand.vmem [shape: f32[64,32], index: 0, kind: input, shape index: {}]   ;;  %s1135_s1 = inlined_call_operand.vmem [shape: bf16[64,64], index: 1, kind: input, shape index: {}]   ;;  %s1136_s3 = inlined_call_operand.vmem [shape: f32[1,32], index: 3, kind: input, shape index: {}]   ;;  %s1137_s4 = inlined_call_operand.vmem [shape: bf16[32,64], index: 4, kind: input, shape index: {}]   ;;  %s1138_s5 = inlined_call_operand.vmem [shape: f32[1,64], index: 5, kind: input, shape index: {}]   ;;  %s1139_s6 = inlined_call_operand.vmem [shape: f32[64,16], index: 6, kind: input, shape index: {}]   ;;  %s1140_s7 = inlined_call_operand.vmem [shape: f32[64,128], index: 7, kind: output, shape index: {}]  }
   0x1   :  { %v845_v0 = vld [vmem:[%s1133_s2] sm:$0xff]   ;;  %v846_v1 = vld [vmem:[%s1133_s2 + $0x8] sm:$0xff]   ;;  %v37_v5 = vld [vmem:[%s1134_s0 + $0x10] sm:$0xff] }
   0x2   :  { %767 = vmatprep.subr.bf16.mxu1 %v845_v0  ;;  %v35_v2 = vld [vmem:[%s1134_s0] sm:$0xff]  ;;  %v36_v3 = vld [vmem:[%s1134_s0 + $0x8] sm:$0xff]  ;;  %v38_v6 = vld [vmem:[%s1134_s0 + $0x18] sm:$0xff] }
   0x3   :  { %768 = vmatpush3.bf16.msra.mxu1 %v845_v0  ;;  %v43_v4 = vpack.c.bf16 %v36_v3, %v35_v2  ;;  %v39_v7 = vld [vmem:[%s1134_s0 + $0x20] sm:$0xff]  ;;  %v40_v8 = vld [vmem:[%s1134_s0 + $0x28] sm:$0xff]  ;;  %v44_v9 = vpack.c.bf16 %v38_v6, %v37_v5  ;;  %v41_v11 = vld [vmem:[%s1134_s0 + $0x30] sm:$0xff] }
   0x4   :  { %769 = vmatprep.subr.bf16.mxu1 %v846_v1  ;;  %v45_v10 = vpack.c.bf16 %v40_v8, %v39_v7  ;;  %v42_v12 = vld [vmem:[%s1134_s0 + $0x38] sm:$0xff]  ;;  %v847_v14 = vld [vmem:[%s1135_s1] sm:$0xff]   ;;  %v987_v36 = vld [vmem:[%s1135_s1 + $0x8] sm:$0xff]  }
   0x5   :  { %771 = vmatprep.mubr.msk.bf16.mxu1 %vm70_vm0, %v43_v4  ;;  %v46_v13 = vpack.c.bf16 %v42_v12, %v41_v11  ;;  %v693_v16 = vld [vmem:[%s1136_s3] ss:$0 sm:$0xff]  ;;  %v992_v37 = vld [vmem:[%s1135_s1 + $0x10] sm:$0xff]   ;;  %v1001_v38 = vld [vmem:[%s1135_s1 + $0x18] sm:$0xff]  }
   0x6   :  { %v851_v39 = vld [vmem:[%s1137_s4] sm:$0xff]   ;;  %v852_v40 = vld [vmem:[%s1137_s4 + $0x8] sm:$0xff]  }
   0x7   :  { %770 = vmatpush3.bf16.msra.mxu1 %v846_v1  ;;  %795 = vmatprep.subr.bf16.mxu0 %v851_v39  ;;  %v708_v62 = vld [vmem:[%s1138_s5] ss:$0 sm:$0xff]  ;;  %s901_s5 = smov 112  }
   0x8   :  { %796 = vmatpush3.bf16.msra.mxu0 %v851_v39 }
   0x9   :  { %797 = vmatprep.subr.bf16.mxu0 %v852_v40 }
   0xa   :  { %772 = vmatmul.mubr.msk.bf16.vlgmr.msra.gmra.mrb[0].mxu1 %vm70_vm0, %v44_v9 }
   0xb   :  { %775 = vmatprep.mubr.msk.bf16.mxu1 %vm70_vm0, %v45_v10 }
   0xc   :  { %798 = vmatpush3.bf16.msra.mxu0 %v852_v40 }
  0x12   :  { %776 = vmatmul.mubr.msk.bf16.gmra.mrb[4].mxu1 %vm70_vm0, %v46_v13 }
  0x13   :  { %787 = vmatprep.mubr.msk.bf16.mxu1 %vm172_vm1, %v847_v14 }
  0xdd   :  { %v773_v15 = vpop.f32.mrb[0].mxu1 }
  0xde   :  { %v117_v17 = vpop.f32.mrb[1].mxu1  ;;  %v126_v19 = vadd.f32 %v773_v15, %v693_v16 }
  0xdf   :  { %v774_v18 = vpop.f32.mrb[2].mxu1  ;;  %v118_v22 = vadd.f32 %v693_v16, %v117_v17 }
  0xe0   :  { %v129_v20 = vadd.f32 %v774_v18, %v693_v16  ;;  %v120_v21 = vpop.f32.mrb[3].mxu1 }
  0xe1   :  { %v121_v23 = vadd.f32 %v693_v16, %v120_v21 }
  0xe2   :  { %v149_v24 = vpack.c.bf16 %v129_v20, %v126_v19 }
  0xe3   :  { %v148_v25 = vpack.c.bf16 %v121_v23, %v118_v22 }
  0xe5   :  { %v777_v26 = vpop.f32.mrb[4].mxu1  ;;  %779 = vmatprep.subr.bf16.mxu1 %v148_v25 }
  0xe6   :  { %v133_v27 = vpop.f32.mrb[5].mxu1  ;;  %780 = vmatpush3.bf16.msra.mxu1 %v148_v25  ;;  %v142_v29 = vadd.f32 %v777_v26, %v693_v16 }
  0xe7   :  { %v778_v28 = vpop.f32.mrb[6].mxu1  ;;  %781 = vmatprep.subr.bf16.mxu1 %v149_v24  ;;  %v134_v32 = vadd.f32 %v693_v16, %v133_v27 }
  0xe8   :  { %v145_v30 = vadd.f32 %v778_v28, %v693_v16  ;;  %v136_v31 = vpop.f32.mrb[7].mxu1 }
  0xe9   :  { %v137_v33 = vadd.f32 %v693_v16, %v136_v31 }
  0xea   :  { %v151_v34 = vpack.c.bf16 %v145_v30, %v142_v29  ;;  %782 = vmatpush3.bf16.msra.mxu1 %v149_v24 }
  0xeb   :  { %v150_v35 = vpack.c.bf16 %v137_v33, %v134_v32 }
  0xed   :  { %783 = vmatprep.subr.bf16.mxu1 %v150_v35 }
  0xee   :  { %784 = vmatpush3.bf16.msra.mxu1 %v150_v35 }
  0xef   :  { %785 = vmatprep.subr.bf16.mxu1 %v151_v34 }
  0xf2   :  { %786 = vmatpush3.bf16.msra.mxu1 %v151_v34 }
  0xf5   :  { %788 = vmatmul.mubr.msk.bf16.vlgmr.msra.gmra.mrb[8].mxu1 %vm172_vm1, %v987_v36 }
  0xf6   :  { %791 = vmatprep.mubr.msk.bf16.mxu1 %vm172_vm1, %v992_v37 }
  0xfd   :  { %792 = vmatmul.mubr.msk.bf16.gmra.mrb[12].mxu1 %vm172_vm1, %v1001_v38 }
  0xfe   :  { %815 = vmatprep.mubr.msk.bf16.mxu1 %vm172_vm1, %v847_v14 }
 0x1c8   :  { %v789_v41 = vpop.f32.mrb[8].mxu1 }
 0x1c9   :  { %v219_v42 = vpop.f32.mrb[9].mxu1  ;;  %v252_v44 = vmax.f32 %v789_v41, 0.0 }
 0x1ca   :  { %v790_v43 = vpop.f32.mrb[10].mxu1  ;;  %v250_v47 = vmax.f32 %v219_v42, 0.0 }
 0x1cb   :  { %v253_v45 = vmax.f32 %v790_v43, 0.0  ;;  %v222_v46 = vpop.f32.mrb[11].mxu1 }
 0x1cc   :  { %v251_v48 = vmax.f32 %v222_v46, 0.0 }
 0x1cd   :  { %v259_v49 = vpack.c.bf16 %v253_v45, %v252_v44 }
 0x1ce   :  { %v258_v50 = vpack.c.bf16 %v251_v48, %v250_v47 }
 0x1d0   :  { %v793_v51 = vpop.f32.mrb[12].mxu1  ;;  %799 = vmatprep.mubr.msk.bf16.mxu0 %vm70_vm0, %v258_v50  ;;  %v433_v50 = vld [vmem:[%s1139_s6 + $0x10] sm:$0xff] }
 0x1d1   :  { %v235_v52 = vpop.f32.mrb[13].mxu1  ;;  %800 = vmatmul.mubr.msk.bf16.vlgmr.msra.gmra.mrb[0].mxu0 %vm70_vm0, %v259_v49  ;;  %v256_v54 = vmax.f32 %v793_v51, 0.0 }
 0x1d2   :  { %v794_v53 = vpop.f32.mrb[14].mxu1  ;;  %v254_v57 = vmax.f32 %v235_v52, 0.0  ;;  %v431_v52 = vld [vmem:[%s1139_s6] sm:$0xff] }
 0x1d3   :  { %v257_v55 = vmax.f32 %v794_v53, 0.0  ;;  %v238_v56 = vpop.f32.mrb[15].mxu1 }
 0x1d4   :  { %v255_v58 = vmax.f32 %v238_v56, 0.0  ;;  %v432_v56 = vld [vmem:[%s1139_s6 + $0x8] sm:$0xff] }
 0x1d5   :  { %v261_v59 = vpack.c.bf16 %v257_v55, %v256_v54  ;;  %v434_v54 = vld [vmem:[%s1139_s6 + $0x18] sm:$0xff] }
 0x1d6   :  { %v260_v60 = vpack.c.bf16 %v255_v58, %v254_v57 }
 0x1d8   :  { %803 = vmatprep.mubr.msk.bf16.mxu0 %vm70_vm0, %v260_v60 }
 0x1d9   :  { %804 = vmatmul.mubr.msk.bf16.gmra.mrb[4].mxu0 %vm70_vm0, %v261_v59 }
 0x2a4   :  { %v801_v61 = vpop.f32.mrb[0].mxu0 }
 0x2a5   :  { %v331_v63 = vpop.f32.mrb[1].mxu0  ;;  %v340_v1 = vadd.f32 %v801_v61, %v708_v62 }
 0x2a6   :  { %v802_v0 = vpop.f32.mrb[2].mxu0  ;;  %v332_v4 = vadd.f32 %v708_v62, %v331_v63 }
 0x2a7   :  { %v343_v2 = vadd.f32 %v802_v0, %v708_v62  ;;  %v334_v3 = vpop.f32.mrb[3].mxu0  ;;  %v435_v0 = vld [vmem:[%s1139_s6 + $0x20] sm:$0xff] }
 0x2a8   :  { %v335_v5 = vadd.f32 %v708_v62, %v334_v3 }
 0x2a9   :  { %v363_v6 = vpack.c.bf16 %v343_v2, %v340_v1 }
 0x2aa   :  { %v362_v7 = vpack.c.bf16 %v335_v5, %v332_v4  ;;  %v436_v5 = vld [vmem:[%s1139_s6 + $0x28] sm:$0xff] }
 0x2ac   :  { %v805_v8 = vpop.f32.mrb[4].mxu0  ;;  %807 = vmatprep.subr.bf16.mxu1 %v362_v7 }
 0x2ad   :  { %v347_v9 = vpop.f32.mrb[5].mxu0  ;;  %808 = vmatpush3.bf16.msra.mxu1 %v362_v7  ;;  %v356_v11 = vadd.f32 %v805_v8, %v708_v62 }
 0x2ae   :  { %v806_v10 = vpop.f32.mrb[6].mxu0  ;;  %809 = vmatprep.subr.bf16.mxu1 %v363_v6  ;;  %v348_v14 = vadd.f32 %v708_v62, %v347_v9  ;;  %v437_v9 = vld [vmem:[%s1139_s6 + $0x30] sm:$0xff] }
 0x2af   :  { %v359_v12 = vadd.f32 %v806_v10, %v708_v62  ;;  %v350_v13 = vpop.f32.mrb[7].mxu0 }
 0x2b0   :  { %v351_v15 = vadd.f32 %v708_v62, %v350_v13  ;;  %v438_v13 = vld [vmem:[%s1139_s6 + $0x38] sm:$0xff] }
 0x2b1   :  { %v365_v16 = vpack.c.bf16 %v359_v12, %v356_v11  ;;  %810 = vmatpush3.bf16.msra.mxu1 %v363_v6 }
 0x2b2   :  { %v364_v17 = vpack.c.bf16 %v351_v15, %v348_v14 }
 0x2b4   :  { %811 = vmatprep.subr.bf16.mxu1 %v364_v17 }
 0x2b5   :  { %812 = vmatpush3.bf16.msra.mxu1 %v364_v17 }
 0x2b6   :  { %813 = vmatprep.subr.bf16.mxu1 %v365_v16 }
 0x2b9   :  { %814 = vmatpush3.bf16.msra.mxu1 %v365_v16 }
 0x2bc   :  { %816 = vmatmul.mubr.msk.bf16.vlgmr.msra.gmra.mrb[16].mxu1 %vm172_vm1, %v987_v36 }
 0x2bd   :  { %819 = vmatprep.mubr.msk.bf16.mxu1 %vm172_vm1, %v992_v37 }
 0x2c4   :  { %820 = vmatmul.mubr.msk.bf16.gmra.mrb[20].mxu1 %vm172_vm1, %v1001_v38 }
 0x38f   :  { %v1025_v18 = vpop.f32.mrb[16].mxu1 }
 0x390   :  { %v441_v19 = vmul.f32 0.5, %v1025_v18  ;;  %v1028_v20 = vpop.f32.mrb[17].mxu1 }
 0x391   :  { %v439_v21 = vmul.f32 0.5, %v1028_v20  ;;  %v1031_v22 = vpop.f32.mrb[18].mxu1 }
 0x392   :  { %v451_v23 = vmul.f32 1.442695, %v441_v19  ;;  %v442_v24 = vmul.f32 0.5, %v1031_v22  ;;  %v1034_v25 = vpop.f32.mrb[19].mxu1 }
 0x393   :  { %v447_v26 = vmul.f32 1.442695, %v439_v21  ;;  %v440_v27 = vmul.f32 0.5, %v1034_v25 }
 0x394   :  { %853 = vpow2.f32 %v451_v23  ;;  %v453_v28 = vmul.f32 1.442695, %v442_v24 }
 0x395   :  { %855 = vpow2.f32 %v447_v26  ;;  %v449_v29 = vmul.f32 1.442695, %v440_v27 }
 0x396   :  { %857 = vpow2.f32 %v453_v28 }
 0x397   :  { %v1037_v30 = vpop.f32.mrb[20].mxu1  ;;  %859 = vpow2.f32 %v449_v29 }
 0x398   :  { %v445_v31 = vmul.f32 0.5, %v1037_v30  ;;  %v1040_v32 = vpop.f32.mrb[21].mxu1 }
 0x399   :  { %v443_v33 = vmul.f32 0.5, %v1040_v32  ;;  %v1043_v34 = vpop.f32.mrb[22].mxu1 }
 0x39a   :  { %v459_v35 = vmul.f32 1.442695, %v445_v31  ;;  %v446_v36 = vmul.f32 0.5, %v1043_v34  ;;  %v1046_v37 = vpop.f32.mrb[23].mxu1 }
 0x39b   :  { %v455_v38 = vmul.f32 1.442695, %v443_v33  ;;  %v444_v39 = vmul.f32 0.5, %v1046_v37 }
 0x39c   :  { %v461_v40 = vmul.f32 1.442695, %v446_v36 }
 0x39d   :  { %861 = vpow2.f32 %v455_v38  ;;  %v457_v41 = vmul.f32 1.442695, %v444_v39 }
 0x39e   :  { %v854_v42 = vpop.eup %853  ;;  %863 = vpow2.f32 %v459_v35 }
 0x39f   :  { %v856_v43 = vpop.eup %855  ;;  %865 = vpow2.f32 %v457_v41  ;;  %475 = vrot.lane.b32.xlu1 %v854_v42, %s901_s5 }
 0x3a0   :  { %471 = vrot.lane.b32.xlu0 %v856_v43, %s901_s5  ;;  %867 = vpow2.f32 %v461_v40  ;;  %v858_v44 = vpop.eup %857 }
 0x3a1   :  { %v860_v45 = vpop.eup %859 }
 0x3a3   :  { %477 = vrot.lane.b32.xlu1 %v858_v44, %s901_s5 }
 0x3a4   :  { %473 = vrot.lane.b32.xlu0 %v860_v45, %s901_s5 }
 0x3a7   :  { %v862_v46 = vpop.eup %861 }
 0x3a8   :  { %v864_v47 = vpop.eup %863  ;;  %479 = vrot.lane.b32.xlu0 %v862_v46, %s901_s5 }
 0x3a9   :  { %v866_v48 = vpop.eup %865 }
 0x3aa   :  { %481 = vrot.lane.b32.xlu1 %v866_v48, %s901_s5  ;;  %v868_v49 = vpop.eup %867 }
 0x3ac   :  { %483 = vrot.lane.b32.xlu0 %v864_v47, %s901_s5 }
 0x3ae   :  { %485 = vrot.lane.b32.xlu1 %v868_v49, %s901_s5 }
 0x3b0   :  { %649 = vrot.lane.b32.xlu0 %v1028_v20, %s902_s9 }
 0x3b2   :  { %651 = vrot.lane.b32.xlu1 %v1034_v25, %s902_s9 }
 0x3b4   :  { %653 = vrot.lane.b32.xlu0 %v1025_v18, %s902_s9 }
 0x3b6   :  { %655 = vrot.lane.b32.xlu1 %v1031_v22, %s902_s9 }
 0x3b8   :  { %657 = vrot.lane.b32.xlu0 %v1040_v32, %s902_s9 }
 0x3ba   :  { %659 = vrot.lane.b32.xlu1 %v1046_v37, %s902_s9 }
 0x3bc   :  { %661 = vrot.lane.b32.xlu0 %v1037_v30, %s902_s9 }
 0x3be   :  { %663 = vrot.lane.b32.xlu1 %v1043_v34, %s902_s9 }
 0x411   :  { %v476_v51 = vpop.permute.xlu1 %475 }
 0x412   :  { %v472_v53 = vpop.permute.xlu0 %471  ;;  %v497_v55 = vmul.f32 %v476_v51, %v433_v50 }
 0x413   :  { %v495_v57 = vmul.f32 %v472_v53, %v431_v52 }
 0x414   :  { %v505_v62 = vadd.f32 %v1025_v18, %v497_v55 }
 0x415   :  { %v478_v58 = vpop.permute.xlu1 %477  ;;  %v503_v1 = vadd.f32 %v495_v57, %v1028_v20 }
 0x416   :  { %v498_v59 = vmul.f32 %v478_v58, %v434_v54  ;;  %v474_v60 = vpop.permute.xlu0 %473 }
 0x417   :  { %v496_v61 = vmul.f32 %v474_v60, %v432_v56 }
 0x418   :  { %v506_v63 = vadd.f32 %v1031_v22, %v498_v59 }
 0x419   :  { %v504_v2 = vadd.f32 %v496_v61, %v1034_v25 }
 0x41a   :  { %v512_v3 = vpack.c.bf16 %v506_v63, %v505_v62  ;;  %v480_v4 = vpop.permute.xlu0 %479 }
 0x41b   :  { %v511_v6 = vpack.c.bf16 %v504_v2, %v503_v1  ;;  %v499_v7 = vmul.f32 %v480_v4, %v435_v0 }
 0x41c   :  { %v482_v8 = vpop.permute.xlu1 %481  ;;  %v520_v23 = vsel %vm515_vm2, %v512_v3, 0 }
 0x41d   :  { %v500_v10 = vmul.f32 %v482_v8, %v436_v5  ;;  %839 = vmatprep.subr.msk.bf16.mxu0 %vm515_vm2, %v511_v6  ;;  %831 = vmatprep.mubr.msk.bf16.mxu0 %vm515_vm2, %v511_v6  ;;  %v517_v11 = vsel %vm515_vm2, %v511_v6, 0  ;;  %v507_v14 = vadd.f32 %v499_v7, %v1040_v32 }
 0x41e   :  { %824 = vmatpush3.bf16.xpose.msra.mxu0 %v517_v11  ;;  %v484_v12 = vpop.permute.xlu0 %483 }
 0x41f   :  { %v508_v15 = vadd.f32 %v500_v10, %v1046_v37  ;;  %v501_v16 = vmul.f32 %v484_v12, %v437_v9  ;;  %840 = vmatprep.subr.msk.bf16.mxu0 %vm515_vm2, %v512_v3 }
 0x420   :  { %v486_v17 = vpop.permute.xlu1 %485 }
 0x421   :  { %v513_v18 = vpack.c.bf16 %v508_v15, %v507_v14  ;;  %v502_v19 = vmul.f32 %v486_v17, %v438_v13  ;;  %v509_v20 = vadd.f32 %v1037_v30, %v501_v16 }
 0x422   :  { %v650_v48 = vpop.permute.xlu0 %649 }
 0x423   :  { %v510_v21 = vadd.f32 %v1043_v34, %v502_v19  ;;  %v523_v24 = vsel %vm515_vm2, %v513_v18, 0 }
 0x424   :  { %v652_v51 = vpop.permute.xlu1 %651 }
 0x425   :  { %v514_v22 = vpack.c.bf16 %v510_v21, %v509_v20 }
 0x426   :  { %826 = vmatpush3.bf16.xpose.msra.mxu0 %v520_v23  ;;  %v654_v54 = vpop.permute.xlu0 %653 }
 0x427   :  { %841 = vmatprep.subr.msk.bf16.mxu0 %vm515_vm2, %v513_v18  ;;  %v526_v25 = vsel %vm515_vm2, %v514_v22, 0 }
 0x428   :  { %v656_v59 = vpop.permute.xlu1 %655 }
 0x42a   :  { %v658_v2 = vpop.permute.xlu0 %657 }
 0x42c   :  { %v660_v6 = vpop.permute.xlu1 %659 }
 0x42e   :  { %828 = vmatpush3.bf16.xpose.msra.mxu0 %v523_v24  ;;  %v662_v9 = vpop.permute.xlu0 %661 }
 0x42f   :  { %842 = vmatprep.subr.msk.bf16.mxu0 %vm515_vm2, %v514_v22 }
 0x430   :  { %v664_v13 = vpop.permute.xlu1 %663 }
 0x436   :  { %830 = vmatpush3.bf16.xpose.msra.mxu0 %v526_v25 }
 0x43d   :  { %832 = vmatmul.mubr.msk.bf16.vlgmr.msra.gmra.mrb[8].mxu0 %vm515_vm2, %v512_v3 }
 0x43e   :  { %835 = vmatprep.mubr.msk.bf16.mxu0 %vm515_vm2, %v513_v18 }
 0x445   :  { %836 = vmatmul.mubr.msk.bf16.gmra.mrb[12].mxu0 %vm515_vm2, %v514_v22 }
 0x510   :  { %v833_v26 = vpop.f32.mrb[8].mxu0 }
 0x511   :  { %v725_v27 = vmul.f32 -1.442695, %v833_v26  ;;  %v562_v28 = vpop.f32.mrb[9].mxu0 }
 0x512   :  { %v723_v29 = vmul.f32 -1.442695, %v562_v28  ;;  %v834_v30 = vpop.f32.mrb[10].mxu0 }
 0x513   :  { %869 = vpow2.f32 %v725_v27  ;;  %v726_v31 = vmul.f32 -1.442695, %v834_v30  ;;  %v565_v32 = vpop.f32.mrb[11].mxu0 }
 0x514   :  { %871 = vpow2.f32 %v723_v29  ;;  %v724_v33 = vmul.f32 -1.442695, %v565_v32 }
 0x515   :  { %873 = vpow2.f32 %v726_v31 }
 0x516   :  { %875 = vpow2.f32 %v724_v33 }
 0x518   :  { %v837_v34 = vpop.f32.mrb[12].mxu0 }
 0x519   :  { %v729_v35 = vmul.f32 -1.442695, %v837_v34  ;;  %v578_v36 = vpop.f32.mrb[13].mxu0 }
 0x51a   :  { %v727_v37 = vmul.f32 -1.442695, %v578_v36  ;;  %v838_v38 = vpop.f32.mrb[14].mxu0 }
 0x51b   :  { %877 = vpow2.f32 %v729_v35  ;;  %v730_v39 = vmul.f32 -1.442695, %v838_v38  ;;  %v581_v40 = vpop.f32.mrb[15].mxu0 }
 0x51c   :  { %879 = vpow2.f32 %v727_v37  ;;  %v728_v41 = vmul.f32 -1.442695, %v581_v40 }
 0x51d   :  { %v870_v42 = vpop.eup %869  ;;  %881 = vpow2.f32 %v730_v39 }
 0x51e   :  { %v872_v43 = vpop.eup %871  ;;  %v619_v44 = vadd.f32 1.0, %v870_v42  ;;  %883 = vpow2.f32 %v728_v41 }
 0x51f   :  { %v874_v45 = vpop.eup %873  ;;  %v617_v46 = vadd.f32 1.0, %v872_v43 }
 0x520   :  { %v876_v47 = vpop.eup %875  ;;  %885 = vrcp.f32 %v619_v44  ;;  %v620_v49 = vadd.f32 1.0, %v874_v45 }
 0x521   :  { %887 = vrcp.f32 %v617_v46  ;;  %v618_v50 = vadd.f32 1.0, %v876_v47 }
 0x522   :  { %889 = vrcp.f32 %v620_v49 }
 0x523   :  { %891 = vrcp.f32 %v618_v50 }
 0x525   :  { %v878_v52 = vpop.eup %877 }
 0x526   :  { %v880_v53 = vpop.eup %879  ;;  %v623_v55 = vadd.f32 1.0, %v878_v52 }
 0x527   :  { %v882_v56 = vpop.eup %881  ;;  %v621_v57 = vadd.f32 1.0, %v880_v53 }
 0x528   :  { %v884_v58 = vpop.eup %883  ;;  %893 = vrcp.f32 %v623_v55  ;;  %v624_v60 = vadd.f32 1.0, %v882_v56 }
 0x529   :  { %895 = vrcp.f32 %v621_v57  ;;  %v622_v61 = vadd.f32 1.0, %v884_v58 }
 0x52a   :  { %v886_v62 = vpop.eup %885  ;;  %897 = vrcp.f32 %v624_v60 }
 0x52b   :  { %v888_v63 = vpop.eup %887  ;;  %v675_v0 = vsel %vm172_vm1, %v886_v62, %v654_v54  ;;  %899 = vrcp.f32 %v622_v61 }
 0x52c   :  { %v890_v1 = vpop.eup %889  ;;  %683 = vst [vmem:[%s1140_s7 + $0x10] sm:$0xff] %v675_v0  ;;  %v673_v3 = vsel %vm172_vm1, %v888_v63, %v650_v48 }
 0x52d   :  { %v892_v4 = vpop.eup %891  ;;  %681 = vst [vmem:[%s1140_s7] sm:$0xff] %v673_v3  ;;  %v676_v5 = vsel %vm172_vm1, %v890_v1, %v656_v59 }
 0x52e   :  { %684 = vst [vmem:[%s1140_s7 + $0x18] sm:$0xff] %v676_v5  ;;  %v674_v7 = vsel %vm172_vm1, %v892_v4, %v652_v51 }
 0x52f   :  { %682 = vst [vmem:[%s1140_s7 + $0x8] sm:$0xff] %v674_v7 }
 0x532   :  { %v894_v8 = vpop.eup %893 }
 0x533   :  { %v896_v10 = vpop.eup %895  ;;  %v679_v11 = vsel %vm172_vm1, %v894_v8, %v662_v9 }
 0x534   :  { %v898_v12 = vpop.eup %897  ;;  %687 = vst [vmem:[%s1140_s7 + $0x30] sm:$0xff] %v679_v11  ;;  %v677_v14 = vsel %vm172_vm1, %v896_v10, %v658_v2 }
 0x535   :  { %v900_v15 = vpop.eup %899  ;;  %685 = vst [vmem:[%s1140_s7 + $0x20] sm:$0xff] %v677_v14  ;;  %v680_v16 = vsel %vm172_vm1, %v898_v12, %v664_v13 }
 0x536   :  { %688 = vst [vmem:[%s1140_s7 + $0x38] sm:$0xff] %v680_v16  ;;  %v678_v17 = vsel %vm172_vm1, %v900_v15, %v660_v6 }
 0x537   :  { %686 = vst [vmem:[%s1140_s7 + $0x28] sm:$0xff] %v678_v17 }

</bundles_post_ra>
